<compile_context>
chip_gen: v7x
topology: tpu7x:2x2x1
jax: 0.10.0
libtpu: 0.0.40
codegen_flags: <defaults>
</compile_context>

<pallas_src>
import math

import jax
import jax.numpy as jnp
from jax.experimental import pallas as pl
from jax.experimental.pallas import tpu as pltpu


def _lstm_cell_kernel(xh_ref, c_ref, w_ref, b_ref, h_out_ref, c_out_ref):
    """One LSTM cell step. All refs are full arrays resident in VMEM.

    xh_ref: [1, I+H]  fused [x | h] row
    c_ref : [1, 1, H] previous cell state
    w_ref : [I+H, 4H] stacked gate weights, columns = [i | f | g | o]
    b_ref : [1, 4H]   pre-summed gate bias
    """
    H = c_ref.shape[-1]

    # Single MXU pass: [1, I+H] @ [I+H, 4H] -> [1, 4H], plus one bias add.
    z = (jnp.dot(xh_ref[...], w_ref[...], preferred_element_type=jnp.float32)
         + b_ref[...])
    # z lanes: [ zi | zf | zg | zo ], each H wide (4H == 128 for H == 32).

    # Full-vreg transcendentals: 2 EUP pushes on 128-lane data instead of 4
    # quarter-width ones.
    s = jax.nn.sigmoid(z)   # [ i | f | .  | o ]
    t = jnp.tanh(z)         # [ . | . | g  | . ]

    # XLU roll by 2H (half the gate axis -> direction-agnostic) aligns g under
    # i, so i*g is an offset-0 slice of a dense 128-lane product.
    ig = (s * pltpu.roll(t, shift=2 * H, axis=1))[:, :H]   # i * g
    f = s[:, H:2 * H]
    o = s[:, 3 * H:4 * H]

    c_prev = c_ref[0]                       # [1, H]
    c_next = f * c_prev + ig
    h_next = o * jnp.tanh(c_next)

    c_out_ref[0] = c_next.astype(c_out_ref.dtype)
    h_out_ref[0] = h_next.astype(h_out_ref.dtype)


def lstm_cell_pallas(xh_row, c_state, w, b):
    """xh_row: [1, I+H]; c_state: [1, 1, H] -> (h_next [1,1,H], c_next [1,1,H])."""
    H = c_state.shape[-1]
    vmem = pl.BlockSpec(memory_space=pltpu.MemorySpace.VMEM)
    out_shapes = (
        jax.ShapeDtypeStruct((1, 1, H), jnp.float32),
        jax.ShapeDtypeStruct((1, 1, H), jnp.float32),
    )
    return pl.pallas_call(
        _lstm_cell_kernel,
        out_shape=out_shapes,
        in_specs=[vmem] * 4,
        out_specs=(vmem, vmem),
    )(xh_row, c_state, w, b)


@jax.jit
def _lstm_forward(inputs, h, c, w, b):
    """inputs: [1,1,I]; h, c: [1,1,H]; returns (hidden_seq, (h_next, c_next))."""
    # seq_size == 1 in the reference module, so a single fused cell step.
    xh = jnp.concatenate([inputs[:, 0, :], h[0]], axis=-1)   # [1, I+H]
    h_next_t, c_next_t = lstm_cell_pallas(xh, c, w, b)       # [1,1,H] each
    hidden_seq = h_next_t                                    # cat of one step
    return hidden_seq, (h_next_t, c_next_t)


class NaiveLSTMPallas:
    """JAX/Pallas port of the PyTorch NaiveLSTM module (seq_size == 1)."""

    def __init__(self, input_size: int, hidden_size: int, key):
        self.input_size = input_size
        self.hidden_size = hidden_size
        stdv = 1.0 / math.sqrt(hidden_size)

        names_shapes = [
            ("w_ii", (hidden_size, input_size)), ("w_hi", (hidden_size, hidden_size)),
            ("b_ii", (hidden_size, 1)), ("b_hi", (hidden_size, 1)),
            ("w_if", (hidden_size, input_size)), ("w_hf", (hidden_size, hidden_size)),
            ("b_if", (hidden_size, 1)), ("b_hf", (hidden_size, 1)),
            ("w_io", (hidden_size, input_size)), ("w_ho", (hidden_size, hidden_size)),
            ("b_io", (hidden_size, 1)), ("b_ho", (hidden_size, 1)),
            ("w_ig", (hidden_size, input_size)), ("w_hg", (hidden_size, hidden_size)),
            ("b_ig", (hidden_size, 1)), ("b_hg", (hidden_size, 1)),
        ]
        keys = jax.random.split(key, len(names_shapes))
        p = {}
        for (name, shape), k in zip(names_shapes, keys):
            p[name] = jax.random.uniform(
                k, shape, dtype=jnp.float32, minval=-stdv, maxval=stdv)
        self.params = p

        # Stack gate weights along the lane axis, reproducing the reference
        # forward's parameter reuse exactly:
        #   i: w_ii, b_ii, w_hi, b_hi
        #   f: w_if, b_ig, w_hg, b_hf      (<- b_ig and w_hg, as in the module)
        #   g: w_ig, b_ig, w_hg, b_hg
        #   o: w_io, b_io, w_ho, b_ho
        wx = jnp.concatenate(
            [p["w_ii"].T, p["w_if"].T, p["w_ig"].T, p["w_io"].T], axis=1)  # [I, 4H]
        wh = jnp.concatenate(
            [p["w_hi"].T, p["w_hg"].T, p["w_hg"].T, p["w_ho"].T], axis=1)  # [H, 4H]
        # Single stacked weight for the fused [x | h] matmul.
        self.w = jnp.concatenate([wx, wh], axis=0)                          # [I+H, 4H]
        # Pre-summed bias (input bias + hidden bias per gate).
        self.b = jnp.concatenate(
            [(p["b_ii"] + p["b_hi"]).T,
             (p["b_ig"] + p["b_hf"]).T,
             (p["b_ig"] + p["b_hg"]).T,
             (p["b_io"] + p["b_ho"]).T], axis=1)                            # [1, 4H]

    def __call__(self, inputs, state):
        """inputs: [1, 1, input_size]; state: ([1,1,H], [1,1,H]).

        Returns (hidden_seq [1,1,H], (h_next_t [1,1,H], c_next_t [1,1,H])),
        matching the PyTorch module's outputs.
        """
        h, c = state
        return _lstm_forward(inputs, h, c, self.w, self.b)


def _reference_forward(model, inputs, state):
    """Plain-JAX replica of the PyTorch forward (column layout) for checking."""
    p = model.params
    h, c = state
    h_t = h[0].T                          # [H, 1]
    c_t = c[0].T                          # [H, 1]
    x = inputs[:, 0, :].T                 # [I, 1]
    sig = jax.nn.sigmoid
    i = sig(p["w_ii"] @ x + p["b_ii"] + p["w_hi"] @ h_t + p["b_hi"])
    f = sig(p["w_if"] @ x + p["b_ig"] + p["w_hg"] @ h_t + p["b_hf"])
    g = jnp.tanh(p["w_ig"] @ x + p["b_ig"] + p["w_hg"] @ h_t + p["b_hg"])
    o = sig(p["w_io"] @ x + p["b_io"] + p["w_ho"] @ h_t + p["b_ho"])
    c_next = f * c_t + i * g
    h_next = o * jnp.tanh(c_next)
    return h_next.T[None], c_next.T[None]


if __name__ == "__main__":
    INPUT_SIZE = 16
    HIDDEN_SIZE = 32          # 4*H == 128 -> gate axis fills one vreg lane-wise

    key = jax.random.PRNGKey(0)
    k_model, k_x, k_h, k_c = jax.random.split(key, 4)

    model = NaiveLSTMPallas(INPUT_SIZE, HIDDEN_SIZE, k_model)

    inputs = jax.random.normal(k_x, (1, 1, INPUT_SIZE), dtype=jnp.float32)
    h0 = jax.random.normal(k_h, (1, 1, HIDDEN_SIZE), dtype=jnp.float32)
    c0 = jax.random.normal(k_c, (1, 1, HIDDEN_SIZE), dtype=jnp.float32)

    hidden_seq, (h_next_t, c_next_t) = model(inputs, (h0, c0))
    jax.block_until_ready((hidden_seq, h_next_t, c_next_t))

    # Sanity check against a plain-JAX replica of the PyTorch forward.
    h_ref, c_ref = _reference_forward(model, inputs, (h0, c0))
    assert hidden_seq.shape == (1, 1, HIDDEN_SIZE)
    assert h_next_t.shape == (1, 1, HIDDEN_SIZE)
    assert c_next_t.shape == (1, 1, HIDDEN_SIZE)
    assert jnp.allclose(h_next_t, h_ref, atol=1e-5, rtol=1e-5), "h mismatch vs reference"
    assert jnp.allclose(c_next_t, c_ref, atol=1e-5, rtol=1e-5), "c mismatch vs reference"

    print("KERNEL_OK")
</pallas_src>

<mosaic_0001>
module attributes {stable_mosaic.version = 11 : i64} {
  func.func @_lstm_cell_kernel(%arg0: memref<1x48xf32, #tpu.memory_space<vmem>>, %arg1: memref<1x1x32xf32, #tpu.memory_space<vmem>>, %arg2: memref<48x128xf32, #tpu.memory_space<vmem>>, %arg3: memref<1x128xf32, #tpu.memory_space<vmem>>, %arg4: memref<1x1x32xf32, #tpu.memory_space<vmem>>, %arg5: memref<1x1x32xf32, #tpu.memory_space<vmem>>) attributes {dimension_semantics = [], scalar_prefetch = 0 : i64, scratch_operands = 0 : i64, tpu.core_type = #tpu.core_type<tc>} {
    %c0 = arith.constant 0 : index
    %c0_0 = arith.constant 0 : index
    %0 = vector.load %arg0[%c0, %c0_0] : memref<1x48xf32, #tpu.memory_space<vmem>>, vector<1x48xf32>
    %c0_1 = arith.constant 0 : index
    %c0_2 = arith.constant 0 : index
    %1 = vector.load %arg2[%c0_1, %c0_2] : memref<48x128xf32, #tpu.memory_space<vmem>>, vector<48x128xf32>
    %cst = arith.constant dense<0.000000e+00> : vector<1x128xf32>
    %2 = tpu.matmul %0, %1, %cst {dimension_numbers = #tpu.dot_dimension_numbers<[1], [0], [0], [1], [0, 0, 1, 1], [], []>} : vector<1x48xf32>, vector<48x128xf32>, vector<1x128xf32> -> vector<1x128xf32>
    %c0_3 = arith.constant 0 : index
    %c0_4 = arith.constant 0 : index
    %3 = vector.load %arg3[%c0_3, %c0_4] : memref<1x128xf32, #tpu.memory_space<vmem>>, vector<1x128xf32>
    %4 = arith.addf %2, %3 : vector<1x128xf32>
    %5 = arith.negf %4 : vector<1x128xf32>
    %6 = math.exp %5 : vector<1x128xf32>
    %cst_5 = arith.constant 1.000000e+00 : f32
    %7 = vector.broadcast %cst_5 : f32 to vector<1x128xf32>
    %8 = arith.addf %7, %6 : vector<1x128xf32>
    %9 = arith.divf %7, %8 : vector<1x128xf32>
    %10 = math.tanh %4 : vector<1x128xf32>
    %c64_i32 = arith.constant 64 : i32
    %11 = tpu.dynamic_rotate %10 by %c64_i32 dim 1 : vector<1x128xf32>, i32 -> vector<1x128xf32>
    %12 = arith.mulf %9, %11 : vector<1x128xf32>
    %13 = vector.extract_strided_slice %12 {offsets = [0, 0], sizes = [1, 32], strides = [1, 1]} : vector<1x128xf32> to vector<1x32xf32>
    %14 = vector.extract_strided_slice %9 {offsets = [0, 32], sizes = [1, 32], strides = [1, 1]} : vector<1x128xf32> to vector<1x32xf32>
    %15 = vector.extract_strided_slice %9 {offsets = [0, 96], sizes = [1, 32], strides = [1, 1]} : vector<1x128xf32> to vector<1x32xf32>
    %c0_6 = arith.constant 0 : index
    %c0_7 = arith.constant 0 : index
    %c0_8 = arith.constant 0 : index
    %16 = vector.load %arg1[%c0_6, %c0_7, %c0_8] : memref<1x1x32xf32, #tpu.memory_space<vmem>>, vector<1x1x32xf32>
    %17 = vector.shape_cast %16 : vector<1x1x32xf32> to vector<1x32xf32>
    %18 = arith.mulf %14, %17 : vector<1x32xf32>
    %19 = arith.addf %18, %13 : vector<1x32xf32>
    %20 = math.tanh %19 : vector<1x32xf32>
    %21 = arith.mulf %15, %20 : vector<1x32xf32>
    %c0_9 = arith.constant 0 : index
    %c0_10 = arith.constant 0 : index
    %c0_11 = arith.constant 0 : index
    %22 = vector.load %arg5[%c0_9, %c0_10, %c0_11] : memref<1x1x32xf32, #tpu.memory_space<vmem>>, vector<1x1x32xf32>
    %23 = vector.shape_cast %22 : vector<1x1x32xf32> to vector<1x32xf32>
    %24 = vector.shape_cast %19 : vector<1x32xf32> to vector<1x1x32xf32>
    tpu.vector_store %arg5[%c0_9, %c0_10, %c0_11], %24 {strides = array<i32>} : memref<1x1x32xf32, #tpu.memory_space<vmem>>, vector<1x1x32xf32>,
    %c0_12 = arith.constant 0 : index
    %c0_13 = arith.constant 0 : index
    %c0_14 = arith.constant 0 : index
    %25 = vector.load %arg4[%c0_12, %c0_13, %c0_14] : memref<1x1x32xf32, #tpu.memory_space<vmem>>, vector<1x1x32xf32>
    %26 = vector.shape_cast %25 : vector<1x1x32xf32> to vector<1x32xf32>
    %27 = vector.shape_cast %21 : vector<1x32xf32> to vector<1x1x32xf32>
    tpu.vector_store %arg4[%c0_12, %c0_13, %c0_14], %27 {strides = array<i32>} : memref<1x1x32xf32, #tpu.memory_space<vmem>>, vector<1x1x32xf32>,
    return
  }
}

</mosaic_0001>

<bundles_post_ra>
// kernel: _lstm_forward.1
= control target key start
LH: loop header
LB: loop body
LE: loop exit
PB: predicated region body
PF: predicated region fallthrough
CT: control target
= control target key end

     0   :  { %11 = vsyncpa [#allocation3], 0  ;;  %s358_s0 = inlined_call_operand.vmem [shape: f32[1,48], index: 0, kind: input, shape index: {}]   ;;  %s359_s1 = inlined_call_operand.vmem [shape: f32[1,1,32], index: 1, kind: input, shape index: {}]   ;;  %s360_s2 = inlined_call_operand.hbm [shape: f32[48,128], index: 2, kind: input, shape index: {}]   ;;  %s361_s3 = inlined_call_operand.vmem [shape: f32[1,128], index: 3, kind: input, shape index: {}]   ;;  %s362_s4 = inlined_call_operand.vmem [shape: f32[1,1,32], index: 4, kind: output, shape index: {0}]   ;;  %s363_s5 = inlined_call_operand.hbm [shape: f32[1,1,32], index: 5, kind: output, shape index: {1}]  }
   0x1   :  { %12 = vsyncpa [#allocation4], 0  ;;  %s277_s18 = smov [#allocation2]   ;;  %s229_s22 = scalar_lea.hbm %s360_s2, 768 }
   0x2   :  { %s22_s19 = sshll.u32 %s277_s18, 4  ;;  %p230_p0 = scmp.ne.s32.totalorder %s360_s2, %s229_s22  ;;  %s23_s19 = int_to_ptr.vmem [resolvable:$true] %s22_s19 }
   0x3   :  { %p233_p1 = scmp.lt.u32.totalorder %s229_s22, %s360_s2 }
   0x5   :  { %p235_p2 = pnand %p233_p1, %p230_p0 }
   0x7   :  { %238 = shalt.err (!%p235_p2)
}
   0x8   :  { %s239_s27 = scalar_lea.vmem %s23_s19, 768  ;;  %p244_p4 = scmp.lt.s32.totalorder %s23_s19, %s23_s19 }
   0x9   :  { %p240_p3 = scmp.ne.s32.totalorder %s23_s19, %s239_s27  ;;  %p245_p5 = scmp.lt.s32.totalorder %s239_s27, %s239_s27 }
   0xb   :  { %p246_p6 = por %p245_p5, %p244_p4 }
   0xd   :  { %p247_p7 = pnand %p246_p6, %p240_p3 }
   0xf   :  { %250 = shalt.err (!%p247_p7)
}
  0x10   :  { %s278_s28 = smov 128   ;;  %s279_s29 = smov 8  }
  0x11   :  { %28 = dma.hbm_to_vmem [thread:$0]  %s360_s2, 768, %s23_s19, [#allocation3], %s278_s28, %s278_s28, %s279_s29  }
  0x12   :  { %273 = dma.done.wait [#allocation3], 768  }
  0x13   :  { %274 = vsyncadd [#allocation3], 4294966528  ;;  %v280_v0 = vmov 0.0|0.0   ;;  %vm281_vm0 = vmmov 0   ;;  %v282_v1 = vmov 0.0   ;;  %v35_v2 = vld [vmem:[#allocation2] sm:$0xff] }
  0x14   :  { %202 = vmatprep.subr.bf16.mxu0 %v280_v0  ;;  %199 = vmatprep.mubr.msk.f32.mxu0 %vm281_vm0, %v282_v1  ;;  %v36_v3 = vld [vmem:[#allocation2 + $0x8] sm:$0xff]  ;;  %v37_v4 = vld [vmem:[#allocation2 + $0x10] sm:$0xff]  ;;  %v38_v6 = vld [vmem:[#allocation2 + $0x18] sm:$0xff]  ;;  %vm42_vm1 = vcmask 392192   ;;  %s283_s10 = smov 64   ;;  %s284_s13 = smov 32  }
  0x15   :  { %v203_v5 = vpack.c.bf16 %v36_v3, %v35_v2  ;;  %v206_v7 = vpack.c.bf16 %v38_v6, %v37_v4  ;;  %v39_v8 = vld [vmem:[#allocation2 + $0x20] sm:$0xff]  ;;  %v40_v9 = vld [vmem:[#allocation2 + $0x28] sm:$0xff]  ;;  %vm151_vm2 = vcmask 253952  }
  0x16   :  { %v209_v10 = vpack.c.bf16 %v40_v9, %v39_v8  ;;  %v34_v11 = vld [vmem:[%s358_s0] sm:$0x1]  ;;  %s285_s0 = smov 96  }
  0x17   :  { %204 = vmatpush3.bf16.msra.mxu0 %v203_v5  ;;  %v41_v12 = vld [vmem:[%s361_s3] sm:$0x1] }
  0x18   :  { %205 = vmatprep.subr.bf16.mxu0 %v280_v0  ;;  %v179_v17 = vld [vmem:[%s359_s1] ss:$0 sm:$0xff]  ;;  %s286_s1 = smov [#allocation5]  }
  0x19   :  { %s166_s3 = sshll.u32 %s286_s1, 4  ;;  %s167_s3 = int_to_ptr.vmem [resolvable:$true] %s166_s3 }
  0x1a   :  { %s251_s14 = scalar_lea.vmem %s167_s3, 16  ;;  %s255_s15 = scalar_lea.vmem %s167_s3, 32 }
  0x1b   :  { %207 = vmatpush3.bf16.msra.mxu0 %v206_v7  ;;  %p252_p8 = scmp.ne.s32.totalorder %s167_s3, %s251_s14  ;;  %p256_p9 = scmp.lt.s32.totalorder %s167_s3, %s167_s3 }
  0x1c   :  { %208 = vmatprep.subr.bf16.mxu0 %v280_v0  ;;  %p257_p10 = scmp.lt.s32.totalorder %s255_s15, %s251_s14 }
  0x1e   :  { %p258_p11 = por %p257_p10, %p256_p9 }
  0x1f   :  { %210 = vmatpush3.bf16.msra.mxu0 %v209_v10 }
  0x20   :  { %p259_p12 = pnand %p258_p11, %p252_p8 }
  0x22   :  { %200 = vmatmul.mubr.msk.f32.vlgmr.msra.gmra.mrb[0].mxu0 %vm42_vm1, %v34_v11 }
  0xf5   :  { %v112_v13 = vpop.f32.mrb[0].mxu0 }
  0xf6   :  { %v113_v14 = vadd.f32 %v112_v13, %v41_v12  ;;  %v201_v15 = vpop.f32.mrb[1].mxu0 }
  0xf8   :  { %221 = vtanh.f32 %v113_v14  ;;  %v178_v18 = vmul.f32 -1.442695, %v113_v14 }
  0xfa   :  { %223 = vpow2.f32 %v178_v18 }
 0x102   :  { %v222_v16 = vpop.eup %221 }
 0x103   :  { %123 = vrot.lane.b32.xlu0 %v222_v16, %s283_s10 }
 0x104   :  { %v224_v19 = vpop.eup %223 }
 0x105   :  { %v119_v20 = vadd.f32 1.0, %v224_v19 }
 0x107   :  { %132 = vrot.lane.b32.xlu0 %v179_v17, %s284_s13  ;;  %225 = vrcp.f32 %v119_v20 }
 0x111   :  { %v226_v21 = vpop.eup %225 }
 0x175   :  { %v124_v22 = vpop.permute.xlu0 %123 }
 0x176   :  { %v125_v23 = vmul.f32 %v226_v21, %v124_v22 }
 0x178   :  { %137 = vrot.lane.b32.xlu1 %v125_v23, %s284_s13 }
 0x179   :  { %v133_v24 = vpop.permute.xlu0 %132 }
 0x17a   :  { %v135_v25 = vmul.f32 %v226_v21, %v133_v24 }
 0x1ea   :  { %v138_v26 = vpop.permute.xlu1 %137 }
 0x1eb   :  { %v140_v27 = vadd.f32 %v138_v26, %v135_v25 }
 0x1ed   :  { %227 = vtanh.f32 %v140_v27  ;;  %148 = vrot.lane.b32.xlu0 %v140_v27, %s285_s0 }
 0x1f7   :  { %v228_v28 = vpop.eup %227 }
 0x1f8   :  { %143 = vrot.lane.b32.xlu1 %v228_v28, %s283_s10 }
 0x25f   :  { %v149_v29 = vpop.permute.xlu0 %148 }
 0x260   :  { %152 = vst.msk [vmem:[#allocation5] sm:$0x1] %vm151_vm2, %v149_v29 }
 0x261   :  { %262 = shalt.err (!%p259_p12)
}
 0x262   :  { %s263_s18 = scalar_lea.hbm %s363_s5, 16 }
 0x263   :  { %p264_p13 = scmp.ne.s32.totalorder %s363_s5, %s263_s18  ;;  %p267_p0 = scmp.lt.u32.totalorder %s263_s18, %s363_s5 }
 0x265   :  { %p269_p1 = pnand %p267_p0, %p264_p13 }
 0x267   :  { %272 = shalt.err (!%p269_p1)
}
 0x268   :  { %169 = dma.vmem_to_hbm [thread:$0]  %s167_s3, 16, %s363_s5, [#allocation4]  }
 0x26a   :  { %v144_v30 = vpop.permute.xlu1 %143 }
 0x26b   :  { %v146_v31 = vmul.f32 %v226_v21, %v144_v30 }
 0x26d   :  { %154 = vrot.lane.b32.xlu1 %v146_v31, %s284_s13 }
 0x2df   :  { %v155_v32 = vpop.permute.xlu1 %154 }
 0x2e0   :  { %157 = vst.msk [vmem:[%s362_s4] sm:$0x1] %vm151_vm2, %v155_v32 }
 0x2e1   :  { %275 = dma.done.wait [#allocation4], 16  }
 0x2e2   :  { %276 = vsyncadd [#allocation4], 4294967280 }
 0x2e3   :  { %175 = vsyncpa [#allocation3], 1 }
 0x2e4   :  { %176 = vsyncpa [#allocation4], 1 }

</bundles_post_ra>
